<compile_context>
chip_gen: v6e
topology: v6e:2x2x1
jax: 0.10.0
libtpu: 0.0.40
codegen_flags: <defaults>
</compile_context>

<pallas_src>
import functools
import math

import jax
import jax.numpy as jnp
from jax.experimental import pallas as pl
from jax.experimental.pallas import tpu as pltpu


def monotonic_kernel(x_ref, w_ref, b_ref, o_ref, *, group_sizes):
    # x_ref: (TB, F)  natural-layout input tile (batch on sublanes)
    # w_ref: (F, H)   already-transformed weight (resident across grid steps)
    # b_ref: (1, H)   bias
    # o_ref: (TB, 1)  per-row scalar output tile
    h = jnp.dot(x_ref[...], w_ref[...],
                preferred_element_type=jnp.float32) + b_ref[...]          # (TB, H)

    # Fused MinLayer (min over each consecutive group of hidden features) and
    # MaxLayer (max over groups): running max of statically-masked lane mins.
    col = jax.lax.broadcasted_iota(jnp.int32, h.shape, 1)                 # (TB, H)
    result = None
    start = 0
    for gs in group_sizes:                                                # static
        in_group = (col >= start) & (col < start + gs)
        gmin = jnp.min(jnp.where(in_group, h, jnp.inf),
                       axis=1, keepdims=True)                             # (TB, 1)
        result = gmin if result is None else jnp.maximum(result, gmin)
        start += gs
    o_ref[...] = result


def monotonic_net_forward(x, weight, bias, nonnegative_bool, monotonic_bool,
                          group_sizes, tb=256):
    """x: (B, F) f32; weight: (H, F) torch layout; bias: (H,).  Returns (B, 1)."""
    B, F = x.shape
    H = weight.shape[0]
    assert H == sum(group_sizes)
    tb = min(tb, B)
    assert B % tb == 0 and tb % 8 == 0, "tb must tile B and be sublane-aligned"

    # Hoisted NonNegativeLinear weight transform (batch-invariant; once per
    # forward, not once per grid step).  Tiny: (H, F) = (12, 6).
    em = jnp.array(
        [1.0 if (m and (nnb is not None)) else 0.0
         for nnb, m in zip(nonnegative_bool, monotonic_bool)],
        dtype=jnp.float32)                                                # (F,)
    sg = jnp.array(
        [-1.0 if nnb is False else 1.0 for nnb in nonnegative_bool],
        dtype=jnp.float32)                                                # (F,)
    w = weight.astype(jnp.float32)                                        # (H, F)
    w_t = jnp.where(em[None, :] > 0.5, sg[None, :] * jnp.exp(w), w)       # (H, F)
    wt = w_t.T                                                            # (F, H)
    b2 = bias.reshape(1, H).astype(jnp.float32)                           # (1, H)

    kernel = functools.partial(monotonic_kernel, group_sizes=tuple(group_sizes))

    out = pl.pallas_call(
        kernel,
        out_shape=jax.ShapeDtypeStruct((B, 1), jnp.float32),
        grid=(B // tb,),
        in_specs=[
            pl.BlockSpec((tb, F), lambda i: (i, 0)),   # contiguous batch tile
            pl.BlockSpec((F, H), lambda i: (0, 0)),    # transformed weight, resident
            pl.BlockSpec((1, H), lambda i: (0, 0)),    # bias, resident
        ],
        out_specs=pl.BlockSpec((tb, 1), lambda i: (i, 0)),
        compiler_params=pltpu.CompilerParams(
            dimension_semantics=("parallel",),
            vmem_limit_bytes=32 * 1024 * 1024,
        ),
    )(x.astype(jnp.float32), wt, b2)
    return out


def reference_forward(x, weight, bias, nonnegative_bool, monotonic_bool, group_sizes):
    """Pure-JAX reference mirroring the torch module exactly."""
    cols = []
    for i, (nnb, m) in enumerate(zip(nonnegative_bool, monotonic_bool)):
        c = weight[:, i]
        if m and nnb is not None:
            c = jnp.exp(c) if nnb else -jnp.exp(c)
        cols.append(c)
    w_t = jnp.stack(cols, axis=1)                                         # (H, F)
    h = jnp.dot(x, w_t.T, precision=jax.lax.Precision.HIGHEST) + bias     # (B, H)
    mins, s = [], 0
    for gs in group_sizes:
        mins.append(jnp.min(h[:, s:s + gs], axis=1, keepdims=True))
        s += gs
    gmin = jnp.concatenate(mins, axis=1)                                  # (B, G)
    return jnp.max(gmin, axis=1, keepdims=True)                           # (B, 1)


if __name__ == "__main__":
    # Module configuration (small, consistent with the torch __init__ signature).
    in_features = 6
    group_sizes = [3, 5, 4]                  # layer1 out_features = 12
    monotonic_bool = [True] * in_features    # all True -> no weight_norm branch
    nonnegative_bool = [True, False, None, True, False, None]
    B = 512                                  # 2 parallel grid steps at tb=256
    H = sum(group_sizes)

    key = jax.random.PRNGKey(0)
    kx, kw, kb = jax.random.split(key, 3)

    # Deterministic inputs and parameters.
    x = jax.random.normal(kx, (B, in_features), dtype=jnp.float32)

    # NonNegativeLinear.reset_parameters: kaiming_uniform(a=sqrt(5)) ->
    # U(-1/sqrt(fan_in), 1/sqrt(fan_in)).
    bound = 1.0 / math.sqrt(in_features)
    weight = jax.random.uniform(kw, (H, in_features), dtype=jnp.float32,
                                minval=-bound, maxval=bound)
    bias = jax.random.uniform(kb, (H,), dtype=jnp.float32,
                              minval=-bound, maxval=bound)

    out = monotonic_net_forward(x, weight, bias, nonnegative_bool,
                                monotonic_bool, group_sizes, tb=256)
    out = jax.block_until_ready(out)

    ref = reference_forward(x, weight, bias, nonnegative_bool,
                            monotonic_bool, group_sizes)
    assert out.shape == (B, 1)
    assert jnp.allclose(out, ref, atol=1e-5, rtol=1e-5), (out, ref)

    print("KERNEL_OK")
</pallas_src>

<mosaic_0001>
module attributes {stable_mosaic.version = 11 : i64} {
  func.func @monotonic_kernel(%arg0: i32, %arg1: memref<256x6xf32, #tpu.memory_space<vmem>>, %arg2: memref<6x12xf32, #tpu.memory_space<vmem>>, %arg3: memref<1x12xf32, #tpu.memory_space<vmem>>, %arg4: memref<256x1xf32, #tpu.memory_space<vmem>>) attributes {dimension_semantics = [#tpu.dimension_semantics<parallel>], iteration_bounds = array<i64: 2>, scalar_prefetch = 0 : i64, scratch_operands = 0 : i64, tpu.core_type = #tpu.core_type<tc>, window_params = [{transform_indices = @transform_0, window_bounds = array<i64: 256, 6>}, {pipeline_mode = #tpu.pipeline_mode<synchronous>, transform_indices = @transform_1, window_bounds = array<i64: 6, 12>}, {pipeline_mode = #tpu.pipeline_mode<synchronous>, transform_indices = @transform_2, window_bounds = array<i64: 1, 12>}, {transform_indices = @transform_3, window_bounds = array<i64: 256, 1>}]} {
    %c0 = arith.constant 0 : index
    %c0_0 = arith.constant 0 : index
    %0 = vector.load %arg1[%c0, %c0_0] : memref<256x6xf32, #tpu.memory_space<vmem>>, vector<256x6xf32>
    %c0_1 = arith.constant 0 : index
    %c0_2 = arith.constant 0 : index
    %1 = vector.load %arg2[%c0_1, %c0_2] : memref<6x12xf32, #tpu.memory_space<vmem>>, vector<6x12xf32>
    %cst = arith.constant dense<0.000000e+00> : vector<256x12xf32>
    %2 = tpu.matmul %0, %1, %cst {dimension_numbers = #tpu.dot_dimension_numbers<[1], [0], [0], [1], [0, 0, 1, 1], [], []>} : vector<256x6xf32>, vector<6x12xf32>, vector<256x12xf32> -> vector<256x12xf32>
    %c0_3 = arith.constant 0 : index
    %c0_4 = arith.constant 0 : index
    %3 = vector.load %arg3[%c0_3, %c0_4] : memref<1x12xf32, #tpu.memory_space<vmem>>, vector<1x12xf32>
    %4 = vector.broadcast %3 : vector<1x12xf32> to vector<256x12xf32>
    %5 = arith.addf %2, %4 : vector<256x12xf32>
    %6 = tpu.iota {dimensions = array<i32: 1>} : vector<256x12xi32>
    %c0_i32 = arith.constant 0 : i32
    %7 = vector.broadcast %c0_i32 : i32 to vector<256x12xi32>
    %8 = arith.cmpi sge, %6, %7 : vector<256x12xi32>
    %c3_i32 = arith.constant 3 : i32
    %9 = vector.broadcast %c3_i32 : i32 to vector<256x12xi32>
    %10 = arith.cmpi slt, %6, %9 : vector<256x12xi32>
    %11 = arith.andi %8, %10 : vector<256x12xi1>
    %cst_5 = arith.constant 0x7F800000 : f32
    %12 = vector.broadcast %cst_5 : f32 to vector<256x12xf32>
    %13 = arith.select %11, %5, %12 : vector<256x12xi1>, vector<256x12xf32>
    %cst_6 = arith.constant dense<0x7F800000> : vector<256xf32>
    %14 = vector.multi_reduction <minimumf>, %13, %cst_6 [1] : vector<256x12xf32> to vector<256xf32>
    %15 = vector.shape_cast %14 : vector<256xf32> to vector<256x1xf32>
    %c3_i32_7 = arith.constant 3 : i32
    %16 = vector.broadcast %c3_i32_7 : i32 to vector<256x12xi32>
    %17 = arith.cmpi sge, %6, %16 : vector<256x12xi32>
    %c8_i32 = arith.constant 8 : i32
    %18 = vector.broadcast %c8_i32 : i32 to vector<256x12xi32>
    %19 = arith.cmpi slt, %6, %18 : vector<256x12xi32>
    %20 = arith.andi %17, %19 : vector<256x12xi1>
    %cst_8 = arith.constant 0x7F800000 : f32
    %21 = vector.broadcast %cst_8 : f32 to vector<256x12xf32>
    %22 = arith.select %20, %5, %21 : vector<256x12xi1>, vector<256x12xf32>
    %cst_9 = arith.constant dense<0x7F800000> : vector<256xf32>
    %23 = vector.multi_reduction <minimumf>, %22, %cst_9 [1] : vector<256x12xf32> to vector<256xf32>
    %24 = vector.shape_cast %23 : vector<256xf32> to vector<256x1xf32>
    %25 = arith.maximumf %15, %24 : vector<256x1xf32>
    %c8_i32_10 = arith.constant 8 : i32
    %26 = vector.broadcast %c8_i32_10 : i32 to vector<256x12xi32>
    %27 = arith.cmpi sge, %6, %26 : vector<256x12xi32>
    %c12_i32 = arith.constant 12 : i32
    %28 = vector.broadcast %c12_i32 : i32 to vector<256x12xi32>
    %29 = arith.cmpi slt, %6, %28 : vector<256x12xi32>
    %30 = arith.andi %27, %29 : vector<256x12xi1>
    %cst_11 = arith.constant 0x7F800000 : f32
    %31 = vector.broadcast %cst_11 : f32 to vector<256x12xf32>
    %32 = arith.select %30, %5, %31 : vector<256x12xi1>, vector<256x12xf32>
    %cst_12 = arith.constant dense<0x7F800000> : vector<256xf32>
    %33 = vector.multi_reduction <minimumf>, %32, %cst_12 [1] : vector<256x12xf32> to vector<256xf32>
    %34 = vector.shape_cast %33 : vector<256xf32> to vector<256x1xf32>
    %35 = arith.maximumf %25, %34 : vector<256x1xf32>
    %c0_13 = arith.constant 0 : index
    %c0_14 = arith.constant 0 : index
    %36 = vector.load %arg4[%c0_13, %c0_14] : memref<256x1xf32, #tpu.memory_space<vmem>>, vector<256x1xf32>
    tpu.vector_store %arg4[%c0_13, %c0_14], %35 {strides = array<i32>} : memref<256x1xf32, #tpu.memory_space<vmem>>, vector<256x1xf32>,
    return
  }
  func.func @transform_0(%arg0: i32) -> (i32, i32) {
    %c0_i32 = arith.constant 0 : i32
    %c0_i32_0 = arith.constant 0 : i32
    return %arg0, %c0_i32 : i32, i32
  }
  func.func @transform_1(%arg0: i32) -> (i32, i32) {
    %c0_i32 = arith.constant 0 : i32
    %c0_i32_0 = arith.constant 0 : i32
    %c0_i32_1 = arith.constant 0 : i32
    return %c0_i32, %c0_i32_0 : i32, i32
  }
  func.func @transform_2(%arg0: i32) -> (i32, i32) {
    %c0_i32 = arith.constant 0 : i32
    %c0_i32_0 = arith.constant 0 : i32
    %c0_i32_1 = arith.constant 0 : i32
    return %c0_i32, %c0_i32_0 : i32, i32
  }
  func.func @transform_3(%arg0: i32) -> (i32, i32) {
    %c0_i32 = arith.constant 0 : i32
    %c0_i32_0 = arith.constant 0 : i32
    return %arg0, %c0_i32 : i32, i32
  }
}

</mosaic_0001>

<bundles_post_ra>
// kernel: tpu_custom_call.1
= control target key start
LH: loop header
LB: loop body
LE: loop exit
PB: predicated region body
PF: predicated region fallthrough
CT: control target
= control target key end

     0   :  { %s1255_s12 = smov 0   ;;  %s2008_s0 = inlined_call_operand.vmem [shape: f32[512,6], index: 0, kind: input, shape index: {}]   ;;  %s2009_s1 = inlined_call_operand.vmem [shape: f32[6,12], index: 1, kind: input, shape index: {}]   ;;  %s2010_s2 = inlined_call_operand.vmem [shape: f32[1,12], index: 2, kind: input, shape index: {}]   ;;  %s2011_s3 = inlined_call_operand.vmem [shape: f32[512,1], index: 3, kind: output, shape index: {}]  }
   0x1 LB: > { %s1089_s13 = sadd.s32 4294967295, %s1233_s12   ;;  %p1093_p0 = scmp.ge.s32.totalorder %s1233_s12, 1  ;;  %s1233_s12 = sphi %s1255_s12, %s13_s12  }
   0x2   : > { %p138_p1 = scmp.lt.s32.totalorder %s1233_s12, 3 }
   0x4   : > { %p139_p2 = pnand %p1093_p0, %p138_p1 }
   0x6   : > { %142 = sbr.rel (%p139_p2) target bundleno = 546 (0x222), region = 32 }
   0xb   : > { %v206_v0 = vld [vmem:[%s2009_s1] sm:$0x3f]  ;;  %vm311_vm0 = vcmask 1045504   ;;  %s1094_s16 = sshll.u32 %s1089_s13, 5  ;;  %vm214_vm1 = vcmask 48128   ;;  %v540_v33 = vlaneseq  ;;  %vm577_vm5 = vcmask 97280  }
   0xc   : > { %1167 = vmatprep.subr.msk.mxu0 %vm311_vm0, %v206_v0  ;;  %1217 = vmatprep.subr.msk.mxu1 %vm311_vm0, %v206_v0  ;;  %p163_p3 = scmp.lt.s32.totalorder %s1094_s16, 63  ;;  %v1345_v35 = vld [vmem:[%s2010_s2] ss:$0 sm:$0xff]  ;;  %vm1000_vm10 = vcmask 7168  }
   0xd   : > { %1168 = vmatpush3.msk.msra.mxu0 %vm311_vm0, %v206_v0  ;;  %1218 = vmatpush3.msk.msra.mxu1 %vm311_vm0, %v206_v0  ;;  %v1340_v34 = vand.u32 127, %v540_v33 }
   0xe   : > { %s2040_s16 = smov (!%p163_p3, %s1094_s16), 63 }
   0xf   : > { %s1095_s17 = sshll.u32 %s2040_s16, 3  ;;  %vm674_vm2 = vcmp.ge.s32.totalorder %v1340_v34, 3  ;;  %vm675_vm3 = vcmp.lt.s32.totalorder %v1340_v34, 8  ;;  %vm543_vm4 = vcmp.lt.s32.totalorder %v1340_v34, 3  ;;  %vm837_vm7 = vcmp.ge.s32.totalorder %v1340_v34, 8 }
  0x10   : > { %s1274_s20 = scalar_lea.vmem %s2008_s0, %s1095_s17  ;;  %vm1352_vm6 = vmand %vm674_vm2, %vm675_vm3  ;;  %vm838_vm8 = vcmp.lt.s32.totalorder %v1340_v34, 12  ;;  %s1919_s25 = scalar_lea.vmem %s2011_s3, %s1095_s17 }
  0x11   : > { %v174_v1 = vld [vmem:[%s1274_s20] sm:$0xff]  ;;  %v175_v3 = vld [vmem:[%s1274_s20 + $0x8] sm:$0xff]  ;;  %v176_v5 = vld [vmem:[%s1274_s20 + $0x10] sm:$0xff] }
  0x12   : > { %v190_v2 = vld [vmem:[%s1274_s20 + $0x80] sm:$0xff]  ;;  %1169 = vmatprep.mubr.msk.f32.mxu0 %vm214_vm1, %v174_v1  ;;  %v191_v4 = vld [vmem:[%s1274_s20 + $0x88] sm:$0xff]  ;;  %v192_v6 = vld [vmem:[%s1274_s20 + $0x90] sm:$0xff] }
  0x13   : > { %1193 = vmatprep.mubr.msk.f32.mxu1 %vm214_vm1, %v190_v2  ;;  %1170 = vmatmul.mubr.msk.f32.vlgmr.msra.gmra.mxu0 %vm214_vm1, %v175_v3  ;;  %v177_v7 = vld [vmem:[%s1274_s20 + $0x18] sm:$0xff]  ;;  %v178_v9 = vld [vmem:[%s1274_s20 + $0x20] sm:$0xff]  ;;  %v179_v11 = vld [vmem:[%s1274_s20 + $0x28] sm:$0xff] }
  0x14   : > { %1194 = vmatmul.mubr.msk.f32.vlgmr.msra.gmra.mxu1 %vm214_vm1, %v191_v4  ;;  %1172 = vmatprep.mubr.msk.f32.mxu0 %vm214_vm1, %v176_v5  ;;  %v193_v8 = vld [vmem:[%s1274_s20 + $0x98] sm:$0xff]  ;;  %v194_v10 = vld [vmem:[%s1274_s20 + $0xa0] sm:$0xff]  ;;  %v195_v12 = vld [vmem:[%s1274_s20 + $0xa8] sm:$0xff] }
  0x15   : > { %1196 = vmatprep.mubr.msk.f32.mxu1 %vm214_vm1, %v192_v6  ;;  %v180_v13 = vld [vmem:[%s1274_s20 + $0x30] sm:$0xff]  ;;  %v181_v15 = vld [vmem:[%s1274_s20 + $0x38] sm:$0xff]  ;;  %v182_v17 = vld [vmem:[%s1274_s20 + $0x40] sm:$0xff] }
  0x16   : > { %v196_v14 = vld [vmem:[%s1274_s20 + $0xb0] sm:$0xff]  ;;  %v197_v16 = vld [vmem:[%s1274_s20 + $0xb8] sm:$0xff]  ;;  %v198_v18 = vld [vmem:[%s1274_s20 + $0xc0] sm:$0xff] }
  0x17   : > { %1173 = vmatmul.mubr.msk.f32.gmra.mxu0 %vm214_vm1, %v177_v7  ;;  %v183_v19 = vld [vmem:[%s1274_s20 + $0x48] sm:$0xff]  ;;  %v184_v21 = vld [vmem:[%s1274_s20 + $0x50] sm:$0xff]  ;;  %v185_v23 = vld [vmem:[%s1274_s20 + $0x58] sm:$0xff] }
  0x18   : > { %1197 = vmatmul.mubr.msk.f32.gmra.mxu1 %vm214_vm1, %v193_v8  ;;  %1175 = vmatprep.mubr.msk.f32.mxu0 %vm214_vm1, %v178_v9  ;;  %v199_v20 = vld [vmem:[%s1274_s20 + $0xc8] sm:$0xff]  ;;  %v200_v22 = vld [vmem:[%s1274_s20 + $0xd0] sm:$0xff]  ;;  %v201_v24 = vld [vmem:[%s1274_s20 + $0xd8] sm:$0xff] }
  0x19   : > { %1199 = vmatprep.mubr.msk.f32.mxu1 %vm214_vm1, %v194_v10  ;;  %v186_v25 = vld [vmem:[%s1274_s20 + $0x60] sm:$0xff]  ;;  %v187_v27 = vld [vmem:[%s1274_s20 + $0x68] sm:$0xff]  ;;  %v188_v29 = vld [vmem:[%s1274_s20 + $0x70] sm:$0xff] }
  0x1a   : > { %v202_v26 = vld [vmem:[%s1274_s20 + $0xe0] sm:$0xff]  ;;  %v203_v28 = vld [vmem:[%s1274_s20 + $0xe8] sm:$0xff]  ;;  %v204_v30 = vld [vmem:[%s1274_s20 + $0xf0] sm:$0xff] }
  0x1b   : > { %1176 = vmatmul.mubr.msk.f32.gmra.mxu0 %vm214_vm1, %v179_v11  ;;  %v189_v31 = vld [vmem:[%s1274_s20 + $0x78] sm:$0xff]  ;;  %vm1370_vm9 = vmand %vm837_vm7, %vm838_vm8 }
  0x1c   : > { %1200 = vmatmul.mubr.msk.f32.gmra.mxu1 %vm214_vm1, %v195_v12  ;;  %1178 = vmatprep.mubr.msk.f32.mxu0 %vm214_vm1, %v180_v13  ;;  %v205_v32 = vld [vmem:[%s1274_s20 + $0xf8] sm:$0xff] }
  0x1d   : > { %1202 = vmatprep.mubr.msk.f32.mxu1 %vm214_vm1, %v196_v14 }
  0x1f   : > { %1179 = vmatmul.mubr.msk.f32.gmra.mxu0 %vm214_vm1, %v181_v15 }
  0x20   : > { %1203 = vmatmul.mubr.msk.f32.gmra.mxu1 %vm214_vm1, %v197_v16  ;;  %1181 = vmatprep.mubr.msk.f32.mxu0 %vm214_vm1, %v182_v17 }
  0x21   : > { %1205 = vmatprep.mubr.msk.f32.mxu1 %vm214_vm1, %v198_v18 }
  0x23   : > { %1182 = vmatmul.mubr.msk.f32.gmra.mxu0 %vm214_vm1, %v183_v19 }
  0x24   : > { %1206 = vmatmul.mubr.msk.f32.gmra.mxu1 %vm214_vm1, %v199_v20  ;;  %1184 = vmatprep.mubr.msk.f32.mxu0 %vm214_vm1, %v184_v21 }
  0x25   : > { %1208 = vmatprep.mubr.msk.f32.mxu1 %vm214_vm1, %v200_v22 }
  0x27   : > { %1185 = vmatmul.mubr.msk.f32.gmra.mxu0 %vm214_vm1, %v185_v23 }
  0x28   : > { %1209 = vmatmul.mubr.msk.f32.gmra.mxu1 %vm214_vm1, %v201_v24  ;;  %1187 = vmatprep.mubr.msk.f32.mxu0 %vm214_vm1, %v186_v25 }
  0x29   : > { %1211 = vmatprep.mubr.msk.f32.mxu1 %vm214_vm1, %v202_v26 }
  0x2b   : > { %1188 = vmatmul.mubr.msk.f32.gmra.mxu0 %vm214_vm1, %v187_v27 }
  0x2c   : > { %1212 = vmatmul.mubr.msk.f32.gmra.mxu1 %vm214_vm1, %v203_v28  ;;  %1190 = vmatprep.mubr.msk.f32.mxu0 %vm214_vm1, %v188_v29 }
  0x2d   : > { %1214 = vmatprep.mubr.msk.f32.mxu1 %vm214_vm1, %v204_v30 }
  0x2f   : > { %1191 = vmatmul.mubr.msk.f32.gmra.mxu0 %vm214_vm1, %v189_v31 }
  0x30   : > { %1215 = vmatmul.mubr.msk.f32.gmra.mxu1 %vm214_vm1, %v205_v32 }
  0xd3   : > { %v1171_v36 = vpop.f32.mrf.mxu0 }
  0xd4   : > { %v1195_v37 = vpop.f32.mrf.mxu1  ;;  %v387_v38 = vadd.f32 %v1171_v36, %v1345_v35 }
  0xd5   : > { %v467_v39 = vadd.f32 %v1195_v37, %v1345_v35  ;;  %v381_v40 = vpop.f32.mrf.mxu0 }
  0xd6   : > { %v461_v41 = vpop.f32.mrf.mxu1  ;;  %v382_v43 = vadd.f32 %v1345_v35, %v381_v40  ;;  %v546_v45 = vsel %vm543_vm4, %v387_v38, inf  ;;  %v678_v51 = vsel %vm1352_vm6, %v387_v38, inf  ;;  %v841_v63 = vsel %vm1370_vm9, %v387_v38, inf }
  0xd7   : > { %v562_v44 = vsel %vm543_vm4, %v467_v39, inf  ;;  %v581_v47 = vsel %vm577_vm5, %v546_v45, inf  ;;  %v1174_v48 = vpop.f32.mrf.mxu0  ;;  %v462_v50 = vadd.f32 %v1345_v35, %v461_v41  ;;  %v712_v56 = vsel %vm577_vm5, %v678_v51, inf }
  0xd8   : > { %v629_v46 = vsel %vm577_vm5, %v562_v44, inf  ;;  %v1198_v49 = vpop.f32.mrf.mxu1  ;;  %582 = vmin.xlane.f32.xlu0 %v581_v47  ;;  %v545_v52 = vsel %vm543_vm4, %v382_v43, inf  ;;  %v397_v54 = vadd.f32 %v1174_v48, %v1345_v35  ;;  %v694_v60 = vsel %vm1352_vm6, %v467_v39, inf }
  0xd9   : > { %630 = vmin.xlane.f32.xlu1 %v629_v46  ;;  %v391_v55 = vpop.f32.mrf.mxu0  ;;  %v578_v57 = vsel %vm577_vm5, %v545_v52, inf  ;;  %v1378_v58 = vadd.f32 %v1198_v49, %v1345_v35  ;;  %v561_v61 = vsel %vm543_vm4, %v462_v50, inf  ;;  %v677_v0 = vsel %vm1352_vm6, %v382_v43, inf }
  0xda   : > { %v471_v59 = vpop.f32.mrf.mxu1  ;;  %v857_v1 = vsel %vm1370_vm9, %v467_v39, inf  ;;  %v693_v2 = vsel %vm1352_vm6, %v462_v50, inf  ;;  %v392_v4 = vadd.f32 %v1345_v35, %v391_v55  ;;  %v548_v6 = vsel %vm543_vm4, %v397_v54, inf }
  0xdb   : > { %v1177_v62 = vpop.f32.mrf.mxu0  ;;  %v472_v5 = vadd.f32 %v1345_v35, %v471_v59  ;;  %v840_v7 = vsel %vm1370_vm9, %v382_v43, inf  ;;  %v760_v8 = vsel %vm577_vm5, %v694_v60, inf  ;;  %v626_v9 = vsel %vm577_vm5, %v561_v61, inf }
  0xdc   : > { %579 = vmin.xlane.f32.xlu0 %v578_v57  ;;  %v1201_v3 = vpop.f32.mrf.mxu1  ;;  %v564_v10 = vsel %vm543_vm4, %v1378_v58, inf  ;;  %v875_v11 = vsel %vm577_vm5, %v841_v63, inf  ;;  %v709_v12 = vsel %vm577_vm5, %v677_v0, inf  ;;  %v923_v13 = vsel %vm577_vm5, %v857_v1, inf }
  0xdd   : > { %713 = vmin.xlane.f32.xlu1 %v712_v56  ;;  %v757_v14 = vsel %vm577_vm5, %v693_v2, inf  ;;  %v401_v15 = vpop.f32.mrf.mxu0  ;;  %v587_v16 = vsel %vm577_vm5, %v548_v6, inf  ;;  %v872_v17 = vsel %vm577_vm5, %v840_v7, inf  ;;  %v856_v18 = vsel %vm1370_vm9, %v462_v50, inf }
  0xde   : > { %v680_v19 = vsel %vm1352_vm6, %v397_v54, inf  ;;  %v481_v20 = vpop.f32.mrf.mxu1  ;;  %v1414_v21 = vsel %vm577_vm5, %v564_v10, inf  ;;  %v563_v22 = vsel %vm543_vm4, %v472_v5, inf  ;;  %v696_v23 = vsel %vm1352_vm6, %v1378_v58, inf }
  0xdf   : > { %v679_v24 = vsel %vm1352_vm6, %v392_v4, inf  ;;  %v1180_v25 = vpop.f32.mrf.mxu0  ;;  %v843_v26 = vsel %vm1370_vm9, %v397_v54, inf  ;;  %v1426_v27 = vadd.f32 %v1177_v62, %v1345_v35  ;;  %v1429_v28 = vadd.f32 %v1345_v35, %v401_v15 }
  0xe0   : > { %627 = vmin.xlane.f32.xlu0 %v626_v9  ;;  %v1432_v29 = vadd.f32 %v1201_v3, %v1345_v35  ;;  %v1204_v30 = vpop.f32.mrf.mxu1  ;;  %v920_v31 = vsel %vm577_vm5, %v856_v18, inf  ;;  %v1436_v32 = vsel %vm577_vm5, %v680_v19, inf  ;;  %v695_v33 = vsel %vm1352_vm6, %v472_v5, inf }
  0xe1   : > { %761 = vmin.xlane.f32.xlu1 %v760_v8  ;;  %v1441_v36 = vadd.f32 %v1345_v35, %v481_v20  ;;  %v1444_v37 = vsel %vm577_vm5, %v563_v22, inf  ;;  %v1447_v38 = vsel %vm577_vm5, %v696_v23, inf  ;;  %v859_v39 = vsel %vm1370_vm9, %v1378_v58, inf  ;;  %v411_v46 = vpop.f32.mrf.mxu0 }
  0xe2   : > { %v842_v40 = vsel %vm1370_vm9, %v392_v4, inf  ;;  %v1455_v41 = vsel %vm577_vm5, %v679_v24, inf  ;;  %v1458_v43 = vsel %vm577_vm5, %v843_v26, inf  ;;  %v547_v44 = vsel %vm543_vm4, %v392_v4, inf  ;;  %v491_v51 = vpop.f32.mrf.mxu1 }
  0xe3   : > { %v858_v45 = vsel %vm1370_vm9, %v472_v5, inf  ;;  %v1465_v47 = vsel %vm577_vm5, %v695_v33, inf  ;;  %v550_v48 = vsel %vm543_vm4, %v1426_v27, inf  ;;  %v549_v49 = vsel %vm543_vm4, %v1429_v28, inf  ;;  %v1183_v61 = vpop.f32.mrf.mxu0 }
  0xe4   : > { %710 = vmin.xlane.f32.xlu0 %v709_v12  ;;  %v566_v50 = vsel %vm543_vm4, %v1432_v29, inf  ;;  %v1477_v52 = vsel %vm577_vm5, %v859_v39, inf  ;;  %v1480_v54 = vsel %vm577_vm5, %v842_v40, inf  ;;  %v565_v55 = vsel %vm543_vm4, %v1441_v36, inf  ;;  %v1207_v2 = vpop.f32.mrf.mxu1 }
  0xe5   : > { %876 = vmin.xlane.f32.xlu1 %v875_v11  ;;  %v417_v56 = vadd.f32 %v1180_v25, %v1345_v35  ;;  %v1487_v57 = vsel %vm577_vm5, %v547_v44, inf  ;;  %v1490_v58 = vsel %vm577_vm5, %v858_v45, inf  ;;  %v412_v59 = vadd.f32 %v1345_v35, %v411_v46  ;;  %v421_v15 = vpop.f32.mrf.mxu0 }
  0xe6   : > { %v497_v60 = vadd.f32 %v1204_v30, %v1345_v35  ;;  %v1495_v62 = vsel %vm577_vm5, %v550_v48, inf  ;;  %v1498_v63 = vsel %vm577_vm5, %v549_v49, inf  ;;  %v1501_v0 = vsel %vm577_vm5, %v566_v50, inf  ;;  %v501_v20 = vpop.f32.mrf.mxu1 }
  0xe7   : > { %v492_v1 = vadd.f32 %v1345_v35, %v491_v51  ;;  %v1505_v3 = vsel %vm577_vm5, %v565_v55, inf  ;;  %v552_v5 = vsel %vm543_vm4, %v417_v56, inf  ;;  %v551_v6 = vsel %vm543_vm4, %v412_v59, inf  ;;  %v1186_v40 = vpop.f32.mrf.mxu0 }
  0xe8   : > { %758 = vmin.xlane.f32.xlu0 %v757_v14  ;;  %v1515_v7 = vsel %vm577_vm5, %v552_v5, inf  ;;  %v1518_v8 = vsel %vm577_vm5, %v551_v6, inf  ;;  %v568_v9 = vsel %vm543_vm4, %v497_v60, inf  ;;  %v683_v14 = vsel %vm1352_vm6, %v412_v59, inf  ;;  %v1210_v46 = vpop.f32.mrf.mxu1 }
  0xe9   : > { %924 = vmin.xlane.f32.xlu1 %v923_v13  ;;  %v567_v10 = vsel %vm543_vm4, %v492_v1, inf  ;;  %v1525_v11 = vsel %vm577_vm5, %v568_v9, inf  ;;  %v684_v13 = vsel %vm1352_vm6, %v417_v56, inf  ;;  %v700_v18 = vsel %vm1352_vm6, %v497_v60, inf  ;;  %v431_v6 = vpop.f32.mrf.mxu0 }
  0xea   : > { %v1528_v12 = vsel %vm577_vm5, %v567_v10, inf  ;;  %v699_v19 = vsel %vm1352_vm6, %v492_v1, inf  ;;  %v1545_v22 = vsel %vm577_vm5, %v700_v18, inf  ;;  %v427_v24 = vadd.f32 %v1183_v61, %v1345_v35 }
  0xeb   : > { %v1548_v23 = vsel %vm577_vm5, %v699_v19, inf  ;;  %v847_v25 = vsel %vm1370_vm9, %v417_v56, inf  ;;  %v846_v30 = vsel %vm1370_vm9, %v412_v59, inf  ;;  %v422_v33 = vadd.f32 %v1345_v35, %v421_v15 }
  0xec   : > { %873 = vmin.xlane.f32.xlu0 %v872_v17  ;;  %v1538_v17 = vsel %vm577_vm5, %v683_v14, inf  ;;  %v1555_v26 = vsel %vm577_vm5, %v847_v25, inf  ;;  %v507_v39 = vadd.f32 %v1207_v2, %v1345_v35  ;;  %v1562_v44 = vsel %vm577_vm5, %v846_v30, inf }
  0xed   : > { %588 = vmin.xlane.f32.xlu1 %v587_v16  ;;  %v1535_v16 = vsel %vm577_vm5, %v684_v13, inf  ;;  %v863_v45 = vsel %vm1370_vm9, %v497_v60, inf  ;;  %v554_v50 = vsel %vm543_vm4, %v427_v24, inf  ;;  %v553_v51 = vsel %vm543_vm4, %v422_v33, inf  ;;  %v511_v13 = vpop.f32.mrf.mxu1 }
  0xee   : > { %v1570_v48 = vsel %vm577_vm5, %v863_v45, inf  ;;  %v1580_v55 = vsel %vm577_vm5, %v554_v50, inf  ;;  %v1583_v56 = vsel %vm577_vm5, %v553_v51, inf  ;;  %v570_v59 = vsel %vm543_vm4, %v507_v39, inf }
  0xef   : > { %v1592_v61 = vsel %vm577_vm5, %v570_v59, inf  ;;  %v686_v2 = vsel %vm1352_vm6, %v427_v24, inf  ;;  %v685_v5 = vsel %vm1352_vm6, %v422_v33, inf  ;;  %v437_v18 = vadd.f32 %v1186_v40, %v1345_v35  ;;  %v1213_v51 = vpop.f32.mrf.mxu1 }
  0xf0   : > { %921 = vmin.xlane.f32.xlu0 %v920_v31  ;;  %v502_v31 = vadd.f32 %v1345_v35, %v501_v20  ;;  %v1602_v9 = vsel %vm577_vm5, %v686_v2, inf  ;;  %v849_v19 = vsel %vm1370_vm9, %v427_v24, inf  ;;  %v848_v25 = vsel %vm1370_vm9, %v422_v33, inf }
  0xf1   : > { %636 = vmin.xlane.f32.xlu1 %v1414_v21  ;;  %v862_v21 = vsel %vm1370_vm9, %v492_v1, inf  ;;  %v1621_v20 = vsel %vm577_vm5, %v849_v19, inf  ;;  %v432_v30 = vadd.f32 %v1345_v35, %v431_v6  ;;  %v517_v45 = vadd.f32 %v1210_v46, %v1345_v35 }
  0xf2   : > { %v1573_v49 = vsel %vm577_vm5, %v862_v21, inf  ;;  %v569_v60 = vsel %vm543_vm4, %v502_v31, inf  ;;  %v701_v10 = vsel %vm1352_vm6, %v502_v31, inf  ;;  %v1189_v21 = vpop.f32.mrf.mxu0  ;;  %v1630_v40 = vsel %vm577_vm5, %v848_v25, inf }
  0xf3   : > { %v1595_v1 = vsel %vm577_vm5, %v569_v60, inf  ;;  %v1615_v15 = vsel %vm577_vm5, %v701_v10, inf  ;;  %v865_v24 = vsel %vm1370_vm9, %v507_v39, inf  ;;  %v864_v50 = vsel %vm1370_vm9, %v502_v31, inf }
  0xf4   : > { %633 = vmin.xlane.f32.xlu0 %v1444_v37  ;;  %v702_v37 = vsel %vm1352_vm6, %v507_v39, inf  ;;  %v512_v33 = vadd.f32 %v1345_v35, %v511_v13  ;;  %v1638_v59 = vsel %vm577_vm5, %v865_v24, inf  ;;  %v1641_v46 = vsel %vm577_vm5, %v864_v50, inf  ;;  %v441_v13 = vpop.f32.mrf.mxu0 }
  0xf5   : > { %719 = vmin.xlane.f32.xlu1 %v1436_v32  ;;  %v1605_v32 = vsel %vm577_vm5, %v685_v5, inf  ;;  %v1612_v14 = vsel %vm577_vm5, %v702_v37, inf  ;;  %v572_v60 = vsel %vm543_vm4, %v517_v45, inf  ;;  %v688_v37 = vsel %vm1352_vm6, %v437_v18, inf }
  0xf6   : > { %v571_v2 = vsel %vm543_vm4, %v512_v33, inf  ;;  %v1658_v5 = vsel %vm577_vm5, %v572_v60, inf  ;;  %v687_v10 = vsel %vm1352_vm6, %v432_v30, inf  ;;  %v1670_v19 = vsel %vm577_vm5, %v688_v37, inf }
  0xf7   : > { %v1661_v6 = vsel %vm577_vm5, %v571_v2, inf  ;;  %v1673_v25 = vsel %vm577_vm5, %v687_v10, inf  ;;  %v704_v24 = vsel %vm1352_vm6, %v517_v45, inf  ;;  %v703_v50 = vsel %vm1352_vm6, %v512_v33, inf }
  0xf8   : > { %716 = vmin.xlane.f32.xlu0 %v1455_v41  ;;  %v555_v41 = vsel %vm543_vm4, %v432_v30, inf  ;;  %v851_v60 = vsel %vm1370_vm9, %v437_v18, inf  ;;  %v850_v37 = vsel %vm1370_vm9, %v432_v30, inf  ;;  %v442_v10 = vadd.f32 %v1345_v35, %v441_v13 }
  0xf9   : > { %767 = vmin.xlane.f32.xlu1 %v1447_v38  ;;  %v556_v38 = vsel %vm543_vm4, %v437_v18, inf  ;;  %v1651_v31 = vsel %vm577_vm5, %v555_v41, inf  ;;  %v1680_v41 = vsel %vm577_vm5, %v704_v24, inf  ;;  %v1689_v2 = vsel %vm577_vm5, %v851_v60, inf  ;;  %v1192_v24 = vpop.f32.mrf.mxu0 }
  0xfa   : > { %v1648_v39 = vsel %vm577_vm5, %v556_v38, inf  ;;  %v521_v38 = vpop.f32.mrf.mxu1  ;;  %2016 = vst [vmem:[#allocation2_spill] sm:$0xff] %v1680_v41  ;;  %v527_v4 = vadd.f32 %v1213_v51, %v1345_v35  ;;  %v1696_v41 = vsel %vm577_vm5, %v850_v37, inf  ;;  %v866_v18 = vsel %vm1370_vm9, %v512_v33, inf }
  0xfb   : > { %v1709_v51 = vsel %vm577_vm5, %v866_v18, inf  ;;  %v681_v37 = vsel %vm1352_vm6, %v1429_v28, inf  ;;  %v861_v42 = vsel %vm1370_vm9, %v1432_v29, inf }
  0xfc   : > { %764 = vmin.xlane.f32.xlu0 %v1465_v47  ;;  %v447_v47 = vadd.f32 %v1189_v21, %v1345_v35  ;;  %v867_v21 = vsel %vm1370_vm9, %v517_v45, inf  ;;  %2018 = vst [vmem:[#allocation4_spill] sm:$0xff] %v1709_v51  ;;  %v557_v45 = vsel %vm543_vm4, %v442_v10, inf  ;;  %v1216_v60 = vpop.f32.mrf.mxu1  ;;  %v706_v51 = vsel %vm1352_vm6, %v527_v4, inf }
  0xfd   : > { %882 = vmin.xlane.f32.xlu1 %v1458_v43  ;;  %v1683_v43 = vsel %vm577_vm5, %v703_v50, inf  ;;  %v522_v50 = vadd.f32 %v1345_v35, %v521_v38  ;;  %v1706_v30 = vsel %vm577_vm5, %v867_v21, inf }
  0xfe   : > { %2017 = vst [vmem:[#allocation3_spill] sm:$0xff] %v1706_v30  ;;  %v558_v13 = vsel %vm543_vm4, %v447_v47, inf  ;;  %v853_v30 = vsel %vm1370_vm9, %v447_v47, inf }
  0xff   : > { %v1716_v33 = vsel %vm577_vm5, %v558_v13, inf  ;;  %v573_v38 = vsel %vm543_vm4, %v522_v50, inf  ;;  %v690_v13 = vsel %vm1352_vm6, %v447_v47, inf }
 0x100   : > { %879 = vmin.xlane.f32.xlu0 %v1480_v54  ;;  %2019 = vst [vmem:[#allocation5_spill] sm:$0xff] %v1716_v33  ;;  %v574_v54 = vsel %vm543_vm4, %v527_v4, inf  ;;  %v1732_v18 = vsel %vm577_vm5, %v573_v38, inf  ;;  %v689_v33 = vsel %vm1352_vm6, %v442_v10, inf }
 0x101   : > { %930 = vmin.xlane.f32.xlu1 %v1477_v52  ;;  %v1719_v52 = vsel %vm577_vm5, %v557_v45, inf  ;;  %v1729_v21 = vsel %vm577_vm5, %v574_v54, inf  ;;  %2022 = vst [vmem:[#allocation8_spill] sm:$0xff] %v1732_v18  ;;  %v451_v45 = vpop.f32.mrf.mxu0  ;;  %v705_v54 = vsel %vm1352_vm6, %v522_v50, inf  ;;  %v1748_v38 = vsel %vm577_vm5, %v689_v33, inf  ;;  %v2028_v53 = vld [vmem:[#allocation2_spill] sm:$0xff] }
 0x102   : > { %2020 = vst [vmem:[#allocation6_spill] sm:$0xff] %v1719_v52  ;;  %2021 = vst [vmem:[#allocation7_spill] sm:$0xff] %v1729_v21  ;;  %v1737_v52 = vsel %vm577_vm5, %v690_v13, inf  ;;  %v1751_v18 = vsel %vm577_vm5, %v706_v51, inf  ;;  %v1754_v13 = vsel %vm577_vm5, %v705_v54, inf  ;;  %v531_v21 = vpop.f32.mrf.mxu1  ;;  %v537_v33 = vadd.f32 %v1216_v60, %v1345_v35 }
 0x103   : > { %2023 = vst [vmem:[#allocation9_spill] sm:$0xff] %v1737_v52  ;;  %2024 = vst [vmem:[#allocation10_spill] sm:$0xff] %v1748_v38  ;;  %v457_v52 = vadd.f32 %v1192_v24, %v1345_v35  ;;  %v1764_v38 = vsel %vm577_vm5, %v853_v30, inf  ;;  %v869_v24 = vsel %vm1370_vm9, %v527_v4, inf  ;;  %v868_v54 = vsel %vm1370_vm9, %v522_v50, inf }
 0x104   : > { %927 = vmin.xlane.f32.xlu0 %v1490_v58  ;;  %v452_v58 = vadd.f32 %v1345_v35, %v451_v45  ;;  %v1774_v47 = vsel %vm577_vm5, %v869_v24, inf  ;;  %v532_v60 = vadd.f32 %v1345_v35, %v531_v21  ;;  %v576_v45 = vsel %vm543_vm4, %v537_v33, inf }
 0x105   : > { %585 = vmin.xlane.f32.xlu1 %v1487_v57  ;;  %v852_v57 = vsel %vm1370_vm9, %v442_v10, inf  ;;  %v1777_v10 = vsel %vm577_vm5, %v868_v54, inf  ;;  %v560_v30 = vsel %vm543_vm4, %v457_v52, inf  ;;  %v1797_v21 = vsel %vm577_vm5, %v576_v45, inf }
 0x106   : > { %v1767_v51 = vsel %vm577_vm5, %v852_v57, inf  ;;  %v1785_v4 = vsel %vm577_vm5, %v560_v30, inf  ;;  %v559_v50 = vsel %vm543_vm4, %v452_v58, inf  ;;  %v692_v57 = vsel %vm1352_vm6, %v457_v52, inf }
 0x107   : > { %v1794_v35 = vsel %vm577_vm5, %v559_v50, inf  ;;  %v691_v54 = vsel %vm1352_vm6, %v452_v58, inf  ;;  %v708_v30 = vsel %vm1352_vm6, %v537_v33, inf  ;;  %v707_v50 = vsel %vm1352_vm6, %v532_v60, inf }
 0x108   : > { %591 = vmin.xlane.f32.xlu0 %v1498_v63  ;;  %v1802_v63 = vsel %vm577_vm5, %v692_v57, inf  ;;  %v1814_v45 = vsel %vm577_vm5, %v691_v54, inf  ;;  %v1817_v34 = vsel %vm577_vm5, %v708_v30, inf  ;;  %v1820_v57 = vsel %vm577_vm5, %v707_v50, inf }
 0x109   : > { %594 = vmin.xlane.f32.xlu1 %v1495_v62  ;;  %v575_v62 = vsel %vm543_vm4, %v532_v60, inf  ;;  %2025 = vst [vmem:[#allocation11_spill] sm:$0xff] %v1802_v63  ;;  %2026 = vst [vmem:[#allocation12_spill] sm:$0xff] %v1820_v57  ;;  %v854_v54 = vsel %vm1370_vm9, %v452_v58, inf  ;;  %v871_v30 = vsel %vm1370_vm9, %v537_v33, inf  ;;  %v870_v50 = vsel %vm1370_vm9, %v532_v60, inf }
 0x10a   : > { %v1805_v24 = vsel %vm577_vm5, %v575_v62, inf  ;;  %v855_v62 = vsel %vm1370_vm9, %v457_v52, inf  ;;  %v1836_v57 = vsel %vm577_vm5, %v854_v54, inf  ;;  %v1839_v52 = vsel %vm577_vm5, %v871_v30, inf }
 0x10b   : > { %v1827_v63 = vsel %vm577_vm5, %v855_v62, inf  ;;  %v721_v33 = vsel %vm577_vm5, %v681_v37, inf  ;;  %v698_v60 = vsel %vm1352_vm6, %v1432_v29, inf  ;;  %v697_v62 = vsel %vm1352_vm6, %v1441_v36, inf }
 0x10c   : > { %639 = vmin.xlane.f32.xlu0 %v1505_v3  ;;  %v2027_v3 = vsel %vm1352_vm6, %v1426_v27, inf  ;;  %v772_v54 = vsel %vm577_vm5, %v698_v60, inf  ;;  %v769_v30 = vsel %vm577_vm5, %v697_v62, inf  ;;  %v845_v37 = vsel %vm1370_vm9, %v1426_v27, inf }
 0x10d   : > { %642 = vmin.xlane.f32.xlu1 %v1501_v0  ;;  %v1842_v0 = vsel %vm577_vm5, %v870_v50, inf  ;;  %v724_v58 = vsel %vm577_vm5, %v2027_v3, inf  ;;  %v844_v50 = vsel %vm1370_vm9, %v1429_v28, inf  ;;  %v887_v3 = vsel %vm577_vm5, %v845_v37, inf }
 0x10e   : > { %v935_v27 = vsel %vm577_vm5, %v861_v42, inf }
 0x110   : > { %722 = vmin.xlane.f32.xlu0 %v721_v33  ;;  %v860_v33 = vsel %vm1370_vm9, %v1441_v36, inf  ;;  %v2029_v36 = vld [vmem:[#allocation3_spill] sm:$0xff] }
 0x111   : > { %725 = vmin.xlane.f32.xlu1 %v724_v58  ;;  %v884_v58 = vsel %vm577_vm5, %v844_v50, inf  ;;  %v932_v60 = vsel %vm577_vm5, %v860_v33, inf }
 0x114   : > { %770 = vmin.xlane.f32.xlu0 %v769_v30 }
 0x115   : > { %773 = vmin.xlane.f32.xlu1 %v772_v54 }
 0x118   : > { %885 = vmin.xlane.f32.xlu0 %v884_v58 }
 0x119   : > { %888 = vmin.xlane.f32.xlu1 %v887_v3 }
 0x11c   : > { %933 = vmin.xlane.f32.xlu0 %v932_v60 }
 0x11d   : > { %936 = vmin.xlane.f32.xlu1 %v935_v27 }
 0x120   : > { %597 = vmin.xlane.f32.xlu0 %v1518_v8 }
 0x121   : > { %600 = vmin.xlane.f32.xlu1 %v1515_v7  ;;  %v2030_v7 = vld [vmem:[#allocation4_spill] sm:$0xff] }
 0x124   : > { %645 = vmin.xlane.f32.xlu0 %v1528_v12  ;;  %v2031_v12 = vld [vmem:[#allocation5_spill] sm:$0xff] }
 0x125   : > { %648 = vmin.xlane.f32.xlu1 %v1525_v11 }
 0x128   : > { %728 = vmin.xlane.f32.xlu0 %v1538_v17 }
 0x129   : > { %731 = vmin.xlane.f32.xlu1 %v1535_v16  ;;  %v2032_v16 = vld [vmem:[#allocation6_spill] sm:$0xff] }
 0x12c   : > { %776 = vmin.xlane.f32.xlu0 %v1548_v23 }
 0x12d   : > { %779 = vmin.xlane.f32.xlu1 %v1545_v22 }
 0x130   : > { %891 = vmin.xlane.f32.xlu0 %v1562_v44  ;;  %v2034_v44 = vld [vmem:[#allocation8_spill] sm:$0xff] }
 0x131   : > { %894 = vmin.xlane.f32.xlu1 %v1555_v26  ;;  %v2033_v26 = vld [vmem:[#allocation7_spill] sm:$0xff] }
 0x134   : > { %939 = vmin.xlane.f32.xlu0 %v1573_v49 }
 0x135   : > { %942 = vmin.xlane.f32.xlu1 %v1570_v48 }
 0x138   : > { %603 = vmin.xlane.f32.xlu0 %v1583_v56 }
 0x139   : > { %606 = vmin.xlane.f32.xlu1 %v1580_v55 }
 0x13c   : > { %651 = vmin.xlane.f32.xlu0 %v1595_v1  ;;  %v2036_v1 = vld [vmem:[#allocation10_spill] sm:$0xff] }
 0x13d   : > { %654 = vmin.xlane.f32.xlu1 %v1592_v61  ;;  %v2035_v61 = vld [vmem:[#allocation9_spill] sm:$0xff] }
 0x140   : > { %734 = vmin.xlane.f32.xlu0 %v1605_v32 }
 0x141   : > { %737 = vmin.xlane.f32.xlu1 %v1602_v9 }
 0x144   : > { %782 = vmin.xlane.f32.xlu0 %v1615_v15 }
 0x145   : > { %785 = vmin.xlane.f32.xlu1 %v1612_v14 }
 0x148   : > { %897 = vmin.xlane.f32.xlu0 %v1630_v40 }
 0x149   : > { %900 = vmin.xlane.f32.xlu1 %v1621_v20 }
 0x14c   : > { %945 = vmin.xlane.f32.xlu0 %v1641_v46 }
 0x14d   : > { %948 = vmin.xlane.f32.xlu1 %v1638_v59 }
 0x150   : > { %609 = vmin.xlane.f32.xlu0 %v1651_v31 }
 0x151   : > { %612 = vmin.xlane.f32.xlu1 %v1648_v39 }
 0x154   : > { %657 = vmin.xlane.f32.xlu0 %v1661_v6 }
 0x155   : > { %660 = vmin.xlane.f32.xlu1 %v1658_v5 }
 0x158   : > { %740 = vmin.xlane.f32.xlu0 %v1673_v25 }
 0x159   : > { %743 = vmin.xlane.f32.xlu1 %v1670_v19 }
 0x15c   : > { %788 = vmin.xlane.f32.xlu0 %v1683_v43 }
 0x15d   : > { %791 = vmin.xlane.f32.xlu1 %v2028_v53 }
 0x160   : > { %903 = vmin.xlane.f32.xlu0 %v1696_v41 }
 0x161   : > { %906 = vmin.xlane.f32.xlu1 %v1689_v2  ;;  %v583_v29 = vpop.xlane.xlu0 %582 }
 0x162   : > { %v631_v28 = vpop.xlane.xlu1 %630 }
 0x164   : > { %951 = vmin.xlane.f32.xlu0 %v2030_v7 }
 0x165   : > { %954 = vmin.xlane.f32.xlu1 %v2029_v36  ;;  %v580_v11 = vpop.xlane.xlu0 %579 }
 0x166   : > { %v714_v8 = vpop.xlane.xlu1 %713 }
 0x167   : > { %v806_v23 = vmax.f32 %v583_v29, %v714_v8 }
 0x168   : > { %615 = vmin.xlane.f32.xlu0 %v2032_v16 }
 0x169   : > { %618 = vmin.xlane.f32.xlu1 %v2031_v12  ;;  %v628_v22 = vpop.xlane.xlu0 %627 }
 0x16a   : > { %v762_v17 = vpop.xlane.xlu1 %761 }
 0x16b   : > { %v822_v56 = vmax.f32 %v631_v28, %v762_v17 }
 0x16c   : > { %663 = vmin.xlane.f32.xlu0 %v2034_v44 }
 0x16d   : > { %666 = vmin.xlane.f32.xlu1 %v2033_v26  ;;  %v711_v49 = vpop.xlane.xlu0 %710 }
 0x16e   : > { %v877_v48 = vpop.xlane.xlu1 %876  ;;  %v805_v15 = vmax.f32 %v580_v11, %v711_v49 }
 0x16f   : > { %v969_v55 = vmax.f32 %v806_v23, %v877_v48 }
 0x170   : > { %746 = vmin.xlane.f32.xlu0 %v2036_v1 }
 0x171   : > { %1002 = vst.msk [vmem:[%s1919_s25 + $0x8] sm:$0xff] %vm1000_vm10, %v969_v55  ;;  %749 = vmin.xlane.f32.xlu1 %v2035_v61  ;;  %v759_v32 = vpop.xlane.xlu0 %758 }
 0x172   : > { %v925_v9 = vpop.xlane.xlu1 %924  ;;  %v821_v46 = vmax.f32 %v628_v22, %v759_v32 }
 0x173   : > { %v985_v14 = vmax.f32 %v822_v56, %v925_v9 }
 0x174   : > { %794 = vmin.xlane.f32.xlu0 %v1754_v13 }
 0x175   : > { %1018 = vst.msk [vmem:[%s1919_s25 + $0x88] sm:$0xff] %vm1000_vm10, %v985_v14  ;;  %797 = vmin.xlane.f32.xlu1 %v1751_v18  ;;  %v874_v40 = vpop.xlane.xlu0 %873 }
 0x176   : > { %v589_v20 = vpop.xlane.xlu1 %588  ;;  %v968_v59 = vmax.f32 %v805_v15, %v874_v40 }
 0x178   : > { %1001 = vst.msk [vmem:[%s1919_s25] sm:$0xff] %vm1000_vm10, %v968_v59  ;;  %909 = vmin.xlane.f32.xlu0 %v1767_v51  ;;  %v2037_v51 = vld [vmem:[#allocation11_spill] sm:$0xff] }
 0x179   : > { %912 = vmin.xlane.f32.xlu1 %v1764_v38  ;;  %v922_v31 = vpop.xlane.xlu0 %921 }
 0x17a   : > { %v637_v39 = vpop.xlane.xlu1 %636  ;;  %v984_v5 = vmax.f32 %v821_v46, %v922_v31 }
 0x17c   : > { %1017 = vst.msk [vmem:[%s1919_s25 + $0x80] sm:$0xff] %vm1000_vm10, %v984_v5  ;;  %957 = vmin.xlane.f32.xlu0 %v1777_v10 }
 0x17d   : > { %960 = vmin.xlane.f32.xlu1 %v1774_v47  ;;  %v634_v19 = vpop.xlane.xlu0 %633 }
 0x17e   : > { %v720_v6 = vpop.xlane.xlu1 %719 }
 0x17f   : > { %v808_v43 = vmax.f32 %v589_v20, %v720_v6 }
 0x180   : > { %621 = vmin.xlane.f32.xlu0 %v1794_v35 }
 0x181   : > { %624 = vmin.xlane.f32.xlu1 %v1785_v4  ;;  %v717_v41 = vpop.xlane.xlu0 %716 }
 0x182   : > { %v768_v25 = vpop.xlane.xlu1 %767 }
 0x183   : > { %v824_v13 = vmax.f32 %v637_v39, %v768_v25 }
 0x184   : > { %669 = vmin.xlane.f32.xlu0 %v1805_v24 }
 0x185   : > { %672 = vmin.xlane.f32.xlu1 %v1797_v21  ;;  %v765_v18 = vpop.xlane.xlu0 %764  ;;  %v2038_v21 = vld [vmem:[#allocation12_spill] sm:$0xff] }
 0x186   : > { %v883_v2 = vpop.xlane.xlu1 %882  ;;  %v823_v35 = vmax.f32 %v634_v19, %v765_v18 }
 0x187   : > { %v971_v38 = vmax.f32 %v808_v43, %v883_v2 }
 0x188   : > { %752 = vmin.xlane.f32.xlu0 %v1814_v45 }
 0x189   : > { %1004 = vst.msk [vmem:[%s1919_s25 + $0x18] sm:$0xff] %vm1000_vm10, %v971_v38  ;;  %755 = vmin.xlane.f32.xlu1 %v2037_v51  ;;  %v880_v10 = vpop.xlane.xlu0 %879 }
 0x18a   : > { %v931_v47 = vpop.xlane.xlu1 %930 }
 0x18b   : > { %v987_v4 = vmax.f32 %v824_v13, %v931_v47 }
 0x18c   : > { %800 = vmin.xlane.f32.xlu0 %v2038_v21 }
 0x18d   : > { %1020 = vst.msk [vmem:[%s1919_s25 + $0x98] sm:$0xff] %vm1000_vm10, %v987_v4  ;;  %803 = vmin.xlane.f32.xlu1 %v1817_v34  ;;  %v928_v62 = vpop.xlane.xlu0 %927 }
 0x18e   : > { %v586_v24 = vpop.xlane.xlu1 %585  ;;  %v986_v30 = vmax.f32 %v823_v35, %v928_v62 }
 0x18f   : > { %v807_v54 = vmax.f32 %v586_v24, %v717_v41 }
 0x190   : > { %1019 = vst.msk [vmem:[%s1919_s25 + $0x90] sm:$0xff] %vm1000_vm10, %v986_v30  ;;  %915 = vmin.xlane.f32.xlu0 %v1836_v57 }
 0x191   : > { %v970_v37 = vmax.f32 %v807_v54, %v880_v10  ;;  %918 = vmin.xlane.f32.xlu1 %v1827_v63  ;;  %v592_v50 = vpop.xlane.xlu0 %591 }
 0x192   : > { %v595_v45 = vpop.xlane.xlu1 %594 }
 0x193   : > { %1003 = vst.msk [vmem:[%s1919_s25 + $0x10] sm:$0xff] %vm1000_vm10, %v970_v37 }
 0x194   : > { %963 = vmin.xlane.f32.xlu0 %v1842_v0 }
 0x195   : > { %966 = vmin.xlane.f32.xlu1 %v1839_v52  ;;  %v640_v3 = vpop.xlane.xlu0 %639 }
 0x196   : > { %v643_v34 = vpop.xlane.xlu1 %642 }
 0x199   : > { %v723_v42 = vpop.xlane.xlu0 %722 }
 0x19a   : > { %v726_v58 = vpop.xlane.xlu1 %725  ;;  %v809_v57 = vmax.f32 %v592_v50, %v723_v42 }
 0x19b   : > { %v810_v63 = vmax.f32 %v595_v45, %v726_v58 }
 0x19d   : > { %v771_v27 = vpop.xlane.xlu0 %770 }
 0x19e   : > { %v774_v33 = vpop.xlane.xlu1 %773  ;;  %v825_v52 = vmax.f32 %v640_v3, %v771_v27 }
 0x19f   : > { %v826_v36 = vmax.f32 %v643_v34, %v774_v33 }
 0x1a1   : > { %v886_v53 = vpop.xlane.xlu0 %885 }
 0x1a2   : > { %v889_v60 = vpop.xlane.xlu1 %888  ;;  %v972_v29 = vmax.f32 %v809_v57, %v886_v53 }
 0x1a3   : > { %v973_v28 = vmax.f32 %v810_v63, %v889_v60 }
 0x1a4   : > { %1005 = vst.msk [vmem:[%s1919_s25 + $0x20] sm:$0xff] %vm1000_vm10, %v972_v29 }
 0x1a5   : > { %1006 = vst.msk [vmem:[%s1919_s25 + $0x28] sm:$0xff] %vm1000_vm10, %v973_v28  ;;  %v934_v7 = vpop.xlane.xlu0 %933 }
 0x1a6   : > { %v937_v0 = vpop.xlane.xlu1 %936  ;;  %v988_v11 = vmax.f32 %v825_v52, %v934_v7 }
 0x1a7   : > { %v989_v8 = vmax.f32 %v826_v36, %v937_v0 }
 0x1a8   : > { %1021 = vst.msk [vmem:[%s1919_s25 + $0xa0] sm:$0xff] %vm1000_vm10, %v988_v11 }
 0x1a9   : > { %1022 = vst.msk [vmem:[%s1919_s25 + $0xa8] sm:$0xff] %vm1000_vm10, %v989_v8  ;;  %v598_v16 = vpop.xlane.xlu0 %597 }
 0x1aa   : > { %v601_v12 = vpop.xlane.xlu1 %600 }
 0x1ad   : > { %v646_v22 = vpop.xlane.xlu0 %645 }
 0x1ae   : > { %v649_v17 = vpop.xlane.xlu1 %648 }
 0x1b1   : > { %v729_v26 = vpop.xlane.xlu0 %728 }
 0x1b2   : > { %v732_v23 = vpop.xlane.xlu1 %731  ;;  %v811_v55 = vmax.f32 %v598_v16, %v729_v26 }
 0x1b3   : > { %v812_v49 = vmax.f32 %v601_v12, %v732_v23 }
 0x1b5   : > { %v777_v48 = vpop.xlane.xlu0 %776 }
 0x1b6   : > { %v780_v44 = vpop.xlane.xlu1 %779  ;;  %v827_v14 = vmax.f32 %v646_v22, %v777_v48 }
 0x1b7   : > { %v828_v32 = vmax.f32 %v649_v17, %v780_v44 }
 0x1b9   : > { %v892_v61 = vpop.xlane.xlu0 %891 }
 0x1ba   : > { %v895_v56 = vpop.xlane.xlu1 %894  ;;  %v974_v9 = vmax.f32 %v811_v55, %v892_v61 }
 0x1bb   : > { %v975_v1 = vmax.f32 %v812_v49, %v895_v56 }
 0x1bc   : > { %1007 = vst.msk [vmem:[%s1919_s25 + $0x30] sm:$0xff] %vm1000_vm10, %v974_v9 }
 0x1bd   : > { %1008 = vst.msk [vmem:[%s1919_s25 + $0x38] sm:$0xff] %vm1000_vm10, %v975_v1  ;;  %v940_v20 = vpop.xlane.xlu0 %939 }
 0x1be   : > { %v943_v15 = vpop.xlane.xlu1 %942  ;;  %v990_v59 = vmax.f32 %v827_v14, %v940_v20 }
 0x1bf   : > { %v991_v40 = vmax.f32 %v828_v32, %v943_v15 }
 0x1c0   : > { %1023 = vst.msk [vmem:[%s1919_s25 + $0xb0] sm:$0xff] %vm1000_vm10, %v990_v59 }
 0x1c1   : > { %1024 = vst.msk [vmem:[%s1919_s25 + $0xb8] sm:$0xff] %vm1000_vm10, %v991_v40  ;;  %v604_v39 = vpop.xlane.xlu0 %603 }
 0x1c2   : > { %v607_v46 = vpop.xlane.xlu1 %606 }
 0x1c5   : > { %v652_v5 = vpop.xlane.xlu0 %651 }
 0x1c6   : > { %v655_v31 = vpop.xlane.xlu1 %654 }
 0x1c9   : > { %v735_v19 = vpop.xlane.xlu0 %734 }
 0x1ca   : > { %v738_v6 = vpop.xlane.xlu1 %737  ;;  %v813_v2 = vmax.f32 %v604_v39, %v735_v19 }
 0x1cb   : > { %v814_v43 = vmax.f32 %v607_v46, %v738_v6 }
 0x1cd   : > { %v783_v41 = vpop.xlane.xlu0 %782 }
 0x1ce   : > { %v786_v25 = vpop.xlane.xlu1 %785  ;;  %v829_v10 = vmax.f32 %v652_v5, %v783_v41 }
 0x1cf   : > { %v830_v47 = vmax.f32 %v655_v31, %v786_v25 }
 0x1d1   : > { %v898_v38 = vpop.xlane.xlu0 %897 }
 0x1d2   : > { %v901_v18 = vpop.xlane.xlu1 %900  ;;  %v976_v51 = vmax.f32 %v813_v2, %v898_v38 }
 0x1d3   : > { %v977_v13 = vmax.f32 %v814_v43, %v901_v18 }
 0x1d4   : > { %1009 = vst.msk [vmem:[%s1919_s25 + $0x40] sm:$0xff] %vm1000_vm10, %v976_v51 }
 0x1d5   : > { %1010 = vst.msk [vmem:[%s1919_s25 + $0x48] sm:$0xff] %vm1000_vm10, %v977_v13  ;;  %v946_v35 = vpop.xlane.xlu0 %945 }
 0x1d6   : > { %v949_v4 = vpop.xlane.xlu1 %948  ;;  %v992_v24 = vmax.f32 %v829_v10, %v946_v35 }
 0x1d7   : > { %v993_v21 = vmax.f32 %v830_v47, %v949_v4 }
 0x1d8   : > { %1025 = vst.msk [vmem:[%s1919_s25 + $0xc0] sm:$0xff] %vm1000_vm10, %v992_v24 }
 0x1d9   : > { %1026 = vst.msk [vmem:[%s1919_s25 + $0xc8] sm:$0xff] %vm1000_vm10, %v993_v21  ;;  %v610_v54 = vpop.xlane.xlu0 %609 }
 0x1da   : > { %v613_v62 = vpop.xlane.xlu1 %612 }
 0x1dd   : > { %v658_v37 = vpop.xlane.xlu0 %657 }
 0x1de   : > { %v661_v30 = vpop.xlane.xlu1 %660 }
 0x1e1   : > { %v741_v50 = vpop.xlane.xlu0 %740 }
 0x1e2   : > { %v744_v45 = vpop.xlane.xlu1 %743  ;;  %v815_v42 = vmax.f32 %v610_v54, %v741_v50 }
 0x1e3   : > { %v816_v58 = vmax.f32 %v613_v62, %v744_v45 }
 0x1e5   : > { %v789_v3 = vpop.xlane.xlu0 %788 }
 0x1e6   : > { %v792_v34 = vpop.xlane.xlu1 %791  ;;  %v831_v53 = vmax.f32 %v658_v37, %v789_v3 }
 0x1e7   : > { %v832_v60 = vmax.f32 %v661_v30, %v792_v34 }
 0x1e9   : > { %v904_v27 = vpop.xlane.xlu0 %903 }
 0x1ea   : > { %v907_v33 = vpop.xlane.xlu1 %906  ;;  %v978_v57 = vmax.f32 %v815_v42, %v904_v27 }
 0x1eb   : > { %v979_v63 = vmax.f32 %v816_v58, %v907_v33 }
 0x1ec   : > { %1011 = vst.msk [vmem:[%s1919_s25 + $0x50] sm:$0xff] %vm1000_vm10, %v978_v57 }
 0x1ed   : > { %1012 = vst.msk [vmem:[%s1919_s25 + $0x58] sm:$0xff] %vm1000_vm10, %v979_v63  ;;  %v952_v29 = vpop.xlane.xlu0 %951 }
 0x1ee   : > { %v955_v28 = vpop.xlane.xlu1 %954  ;;  %v994_v52 = vmax.f32 %v831_v53, %v952_v29 }
 0x1ef   : > { %v995_v36 = vmax.f32 %v832_v60, %v955_v28 }
 0x1f0   : > { %1027 = vst.msk [vmem:[%s1919_s25 + $0xd0] sm:$0xff] %vm1000_vm10, %v994_v52 }
 0x1f1   : > { %1028 = vst.msk [vmem:[%s1919_s25 + $0xd8] sm:$0xff] %vm1000_vm10, %v995_v36  ;;  %v616_v7 = vpop.xlane.xlu0 %615 }
 0x1f2   : > { %v619_v0 = vpop.xlane.xlu1 %618 }
 0x1f5   : > { %v664_v11 = vpop.xlane.xlu0 %663 }
 0x1f6   : > { %v667_v8 = vpop.xlane.xlu1 %666 }
 0x1f9   : > { %v747_v16 = vpop.xlane.xlu0 %746 }
 0x1fa   : > { %v750_v12 = vpop.xlane.xlu1 %749  ;;  %v817_v26 = vmax.f32 %v616_v7, %v747_v16 }
 0x1fb   : > { %v818_v23 = vmax.f32 %v619_v0, %v750_v12 }
 0x1fd   : > { %v795_v22 = vpop.xlane.xlu0 %794 }
 0x1fe   : > { %v798_v17 = vpop.xlane.xlu1 %797  ;;  %v833_v61 = vmax.f32 %v664_v11, %v795_v22 }
 0x1ff   : > { %v834_v56 = vmax.f32 %v667_v8, %v798_v17 }
 0x201   : > { %v910_v48 = vpop.xlane.xlu0 %909 }
 0x202   : > { %v913_v44 = vpop.xlane.xlu1 %912  ;;  %v980_v55 = vmax.f32 %v817_v26, %v910_v48 }
 0x203   : > { %v981_v49 = vmax.f32 %v818_v23, %v913_v44 }
 0x204   : > { %1013 = vst.msk [vmem:[%s1919_s25 + $0x60] sm:$0xff] %vm1000_vm10, %v980_v55 }
 0x205   : > { %1014 = vst.msk [vmem:[%s1919_s25 + $0x68] sm:$0xff] %vm1000_vm10, %v981_v49  ;;  %v958_v9 = vpop.xlane.xlu0 %957 }
 0x206   : > { %v961_v1 = vpop.xlane.xlu1 %960  ;;  %v996_v14 = vmax.f32 %v833_v61, %v958_v9 }
 0x207   : > { %v997_v32 = vmax.f32 %v834_v56, %v961_v1 }
 0x208   : > { %1029 = vst.msk [vmem:[%s1919_s25 + $0xe0] sm:$0xff] %vm1000_vm10, %v996_v14 }
 0x209   : > { %1030 = vst.msk [vmem:[%s1919_s25 + $0xe8] sm:$0xff] %vm1000_vm10, %v997_v32  ;;  %v622_v20 = vpop.xlane.xlu0 %621 }
 0x20a   : > { %v625_v15 = vpop.xlane.xlu1 %624 }
 0x20d   : > { %v670_v59 = vpop.xlane.xlu0 %669 }
 0x20e   : > { %v673_v40 = vpop.xlane.xlu1 %672 }
 0x211   : > { %v753_v39 = vpop.xlane.xlu0 %752 }
 0x212   : > { %v756_v46 = vpop.xlane.xlu1 %755  ;;  %v819_v19 = vmax.f32 %v622_v20, %v753_v39 }
 0x213   : > { %v820_v6 = vmax.f32 %v625_v15, %v756_v46 }
 0x215   : > { %v801_v5 = vpop.xlane.xlu0 %800 }
 0x216   : > { %v804_v31 = vpop.xlane.xlu1 %803  ;;  %v835_v38 = vmax.f32 %v670_v59, %v801_v5 }
 0x217   : > { %v836_v18 = vmax.f32 %v673_v40, %v804_v31 }
 0x219   : > { %v916_v41 = vpop.xlane.xlu0 %915 }
 0x21a   : > { %v919_v25 = vpop.xlane.xlu1 %918  ;;  %v982_v2 = vmax.f32 %v819_v19, %v916_v41 }
 0x21b   : > { %v983_v43 = vmax.f32 %v820_v6, %v919_v25 }
 0x21c   : > { %1015 = vst.msk [vmem:[%s1919_s25 + $0x70] sm:$0xff] %vm1000_vm10, %v982_v2 }
 0x21d   : > { %1016 = vst.msk [vmem:[%s1919_s25 + $0x78] sm:$0xff] %vm1000_vm10, %v983_v43  ;;  %v964_v51 = vpop.xlane.xlu0 %963 }
 0x21e   : > { %v967_v13 = vpop.xlane.xlu1 %966  ;;  %v998_v10 = vmax.f32 %v835_v38, %v964_v51 }
 0x21f   : > { %v999_v47 = vmax.f32 %v836_v18, %v967_v13 }
 0x220   : > { %1031 = vst.msk [vmem:[%s1919_s25 + $0xf0] sm:$0xff] %vm1000_vm10, %v998_v10 }
 0x221   : > { %1032 = vst.msk [vmem:[%s1919_s25 + $0xf8] sm:$0xff] %vm1000_vm10, %v999_v47 }
 0x222 PF: > { %s13_s12 = sadd.s32 1, %s1233_s12  }
 0x223   : > { %p10_p4 = scmp.ge.s32.totalorder %s13_s12, 4  }
 0x225   :  { %12 = sbr.rel (!%p10_p4) target bundleno = 1 (0x1), region = 62 }

</bundles_post_ra>
